<compile_context>
chip_gen: v6e
topology: v6e:2x2x1
jax: 0.10.0
libtpu: 0.0.40
codegen_flags: <defaults>
</compile_context>

<pallas_src>
import functools

import jax
import jax.numpy as jnp
import numpy as np
from jax import lax
from jax.experimental import pallas as pl
from jax.experimental.pallas import tpu as pltpu

# Fixed (non-trainable) GradLayer parameters:
#   weight_v = [[0,-1,0],[0,0,0],[0,1,0]] -> x_v[i,j] = x[i+1,j] - x[i-1,j]
#   weight_h = [[0,0,0],[-1,0,1],[0,0,0]] -> x_h[i,j] = x[i,j+1] - x[i,j-1]
# (cross-correlation with zero padding = shifted differences)
GRAY_COEFFS = (65.738 / 256.0, 129.057 / 256.0, 25.064 / 256.0)

_VMEM_BUDGET = 20 * 1024 * 1024   # target live footprint (safe for v7x scoped VMEM)
_VMEM_LIMIT = 48 * 1024 * 1024    # explicit scoped-VMEM limit (< v7x 64 MiB physical)


def _grad_loss_kernel(out_ref, gt_ref, out_prev_ref, out_next_ref,
                      gt_prev_ref, gt_next_ref,
                      og_ref, gg_ref, part_ref,
                      *, do_gray, block_h, h_real, w_real, need_mask):
    hb = pl.program_id(1)
    num_hb = pl.num_programs(1)
    bh, wp = og_ref.shape

    row_ids = lax.broadcasted_iota(jnp.int32, (bh, wp), 0)
    col_ids = lax.broadcasted_iota(jnp.int32, (bh, wp), 1)
    zero_row = jnp.zeros((1, wp), jnp.float32)
    is_first = hb == 0
    is_last = hb == num_hb - 1

    def gray(ref):
        # ref: (C, rows, wp) block -> (rows, wp) luma (VPU FMAs only).
        if do_gray:
            c0, c1, c2 = GRAY_COEFFS
            return c0 * ref[0] + c1 * ref[1] + c2 * ref[2]
        return ref[0]

    def grad_mag(g, prev_row, next_row):
        # Interior points via circular rotates (XLU slot, no concat temporaries).
        # Only squares of the differences are used and the wrapped boundary
        # rows/cols are overwritten with exactly-computed values below, so the
        # result does not depend on the rotate direction.
        x_v = pltpu.roll(g, bh - 1, 0) - pltpu.roll(g, 1, 0)   # +/- (g[i+1] - g[i-1])
        x_h = pltpu.roll(g, wp - 1, 1) - pltpu.roll(g, 1, 1)   # +/- (g[,j+1] - g[,j-1])
        # Exact boundary rows (halo rows carry the neighbour-block data; they
        # are zeroed at the image top/bottom = conv zero padding).
        x_v = jnp.where(row_ids == 0, g[1:2, :] - prev_row, x_v)
        x_v = jnp.where(row_ids == bh - 1, next_row - g[bh - 2:bh - 1, :], x_v)
        # Exact boundary columns (conv zero padding left/right).
        x_h = jnp.where(col_ids == 0, g[:, 1:2], x_h)
        x_h = jnp.where(col_ids == wp - 1, -g[:, wp - 2:wp - 1], x_h)
        return jnp.sqrt(x_v * x_v + x_h * x_h + 1e-6)

    def process(img_ref, prev_ref, next_ref):
        g = gray(img_ref)                                          # (bh, wp)
        prev_row = jnp.where(is_first, zero_row, gray(prev_ref)[7:8, :])
        next_row = jnp.where(is_last, zero_row, gray(next_ref)[0:1, :])
        return grad_mag(g, prev_row, next_row)

    og = process(out_ref, out_prev_ref, out_next_ref)
    gg = process(gt_ref, gt_prev_ref, gt_next_ref)
    og_ref[...] = og
    gg_ref[...] = gg

    # Per-step partial sum of |out_grad - gt_grad| (final mean done in wrapper,
    # so no cross-step state and both grid axes stay "parallel").
    diff = jnp.abs(og - gg)
    if need_mask:
        valid = ((hb * block_h + row_ids) < h_real) & (col_ids < w_real)
        diff = jnp.where(valid, diff, 0.0)
    part_ref[...] = jnp.sum(diff).reshape(1, 1)


def grad_loss(output, gt_img, *, block_h_cap=None):
    """Returns (loss, out_grad, gt_grad) matching GradLoss.forward (NCHW f32)."""
    assert output.shape == gt_img.shape
    N, C, H, W = output.shape
    assert C in (1, 3), "GradLayer supports only 1- or 3-channel images"
    do_gray = (C == 3)

    output = output.astype(jnp.float32)
    gt_img = gt_img.astype(jnp.float32)

    # Lane-dense minor dim and sublane-aligned rows.
    W_pad = ((W + 127) // 128) * 128
    H8 = ((H + 7) // 8) * 8

    # Row-block sized from a VMEM budget: double-buffered inputs (2 imgs x C ch)
    # + outputs (2) + slack for temporaries, all x 4 B per element per row.
    per_row_bytes = 4 * W_pad * (2 * 2 * C + 2 * 2 + 4)
    block_h = (_VMEM_BUDGET // per_row_bytes) // 8 * 8
    block_h = int(max(8, min(block_h, 512, H8)))
    if block_h_cap is not None:
        block_h = int(max(8, min(block_h, (block_h_cap // 8) * 8)))
    num_hb = -(-H // block_h)
    H_pad = num_hb * block_h
    rpb = block_h // 8          # 8-row halo blocks per row block
    total_r8 = H_pad // 8

    def pad(x):
        if H_pad == H and W_pad == W:
            return x
        return jnp.pad(x, ((0, 0), (0, 0), (0, H_pad - H), (0, W_pad - W)))

    out_p = pad(output)
    gt_p = pad(gt_img)

    img_spec = pl.BlockSpec((None, C, block_h, W_pad),
                            lambda n, hb: (n, 0, hb, 0))
    prev_spec = pl.BlockSpec(
        (None, C, 8, W_pad),
        lambda n, hb: (n, 0, jnp.maximum(hb * rpb - 1, 0), 0))
    next_spec = pl.BlockSpec(
        (None, C, 8, W_pad),
        lambda n, hb: (n, 0, jnp.minimum((hb + 1) * rpb, total_r8 - 1), 0))
    grad_spec = pl.BlockSpec((None, block_h, W_pad), lambda n, hb: (n, hb, 0))
    part_spec = pl.BlockSpec((None, None, 1, 1), lambda n, hb: (n, hb, 0, 0))

    kernel = functools.partial(
        _grad_loss_kernel,
        do_gray=do_gray, block_h=block_h, h_real=H, w_real=W,
        need_mask=(H_pad != H or W_pad != W))

    og, gg, partial = pl.pallas_call(
        kernel,
        out_shape=(
            jax.ShapeDtypeStruct((N, H_pad, W_pad), jnp.float32),
            jax.ShapeDtypeStruct((N, H_pad, W_pad), jnp.float32),
            jax.ShapeDtypeStruct((N, num_hb, 1, 1), jnp.float32),
        ),
        grid_spec=pltpu.PrefetchScalarGridSpec(
            num_scalar_prefetch=0,
            grid=(N, num_hb),
            in_specs=[img_spec, img_spec,
                      prev_spec, next_spec,     # halo rows for `output`
                      prev_spec, next_spec],    # halo rows for `gt_img`
            out_specs=[grad_spec, grad_spec, part_spec],
        ),
        compiler_params=pltpu.CompilerParams(
            dimension_semantics=("parallel", "parallel"),
            vmem_limit_bytes=_VMEM_LIMIT),
    )(out_p, gt_p, out_p, out_p, gt_p, gt_p)

    loss = jnp.sum(partial) / jnp.float32(N * H * W)
    if H_pad != H or W_pad != W:
        og = og[:, :H, :W]
        gg = gg[:, :H, :W]
    return loss, og[:, None], gg[:, None]


def grad_loss_ref(output, gt_img):
    """Pure-JAX reference mirroring the PyTorch module."""
    def gray(x):
        c = jnp.array(GRAY_COEFFS, jnp.float32).reshape(1, 3, 1, 1)
        return jnp.sum(x * c, axis=1, keepdims=True)

    def grad(x):
        if x.shape[1] == 3:
            x = gray(x)
        xp = jnp.pad(x, ((0, 0), (0, 0), (1, 1), (1, 1)))
        x_v = xp[:, :, 2:, 1:-1] - xp[:, :, :-2, 1:-1]
        x_h = xp[:, :, 1:-1, 2:] - xp[:, :, 1:-1, :-2]
        return jnp.sqrt(x_v * x_v + x_h * x_h + 1e-6)

    og = grad(output)
    gg = grad(gt_img)
    return jnp.mean(jnp.abs(og - gg)), og, gg


if __name__ == "__main__":
    key = jax.random.PRNGKey(0)

    def check(shape, **kw):
        k = jax.random.fold_in(key, shape[1] * 10000 + shape[2] * 100 + shape[3])
        k1, k2 = jax.random.split(k)
        out = jax.random.uniform(k1, shape, dtype=jnp.float32)
        gt = jax.random.uniform(k2, shape, dtype=jnp.float32)

        res = grad_loss(out, gt, **kw)
        jax.block_until_ready(res)
        loss, og, gg = res

        loss_r, og_r, gg_r = grad_loss_ref(out, gt)
        assert np.allclose(np.asarray(loss), np.asarray(loss_r), atol=1e-5), shape
        assert np.allclose(np.asarray(og), np.asarray(og_r), atol=1e-5), shape
        assert np.allclose(np.asarray(gg), np.asarray(gg_r), atol=1e-5), shape

    check((2, 3, 16, 16))                     # primary small case
    check((2, 3, 20, 40))                     # exercises H/W padding + sum mask
    check((1, 3, 32, 128), block_h_cap=8)     # multiple row blocks -> halo path
    check((2, 1, 16, 16))                     # single-channel path (no gray)

    print("KERNEL_OK")
</pallas_src>

<mosaic_0001>
module attributes {stable_mosaic.version = 11 : i64} {
  func.func @_grad_loss_kernel(%arg0: i32, %arg1: i32, %arg2: memref<1x3x16x128xf32, #tpu.memory_space<vmem>>, %arg3: memref<1x3x16x128xf32, #tpu.memory_space<vmem>>, %arg4: memref<1x3x8x128xf32, #tpu.memory_space<vmem>>, %arg5: memref<1x3x8x128xf32, #tpu.memory_space<vmem>>, %arg6: memref<1x3x8x128xf32, #tpu.memory_space<vmem>>, %arg7: memref<1x3x8x128xf32, #tpu.memory_space<vmem>>, %arg8: memref<1x16x128xf32, #tpu.memory_space<vmem>>, %arg9: memref<1x16x128xf32, #tpu.memory_space<vmem>>, %arg10: memref<1x1x1x1xf32, #tpu.memory_space<vmem>>) attributes {dimension_semantics = [#tpu.dimension_semantics<parallel>, #tpu.dimension_semantics<parallel>], iteration_bounds = array<i64: 2, 1>, scalar_prefetch = 0 : i64, scratch_operands = 0 : i64, tpu.core_type = #tpu.core_type<tc>, window_params = [{transform_indices = @transform_0, window_bounds = array<i64: 1, 3, 16, 128>}, {transform_indices = @transform_1, window_bounds = array<i64: 1, 3, 16, 128>}, {transform_indices = @transform_2, window_bounds = array<i64: 1, 3, 8, 128>}, {transform_indices = @transform_3, window_bounds = array<i64: 1, 3, 8, 128>}, {transform_indices = @transform_4, window_bounds = array<i64: 1, 3, 8, 128>}, {transform_indices = @transform_5, window_bounds = array<i64: 1, 3, 8, 128>}, {transform_indices = @transform_6, window_bounds = array<i64: 1, 16, 128>}, {transform_indices = @transform_7, window_bounds = array<i64: 1, 16, 128>}, {transform_indices = @transform_8, window_bounds = array<i64: 1, 1, 1, 1>}]} {
    %0 = tpu.iota {dimensions = array<i32: 0>} : vector<16x128xi32>
    %1 = tpu.iota {dimensions = array<i32: 1>} : vector<16x128xi32>
    %cst = arith.constant 0.000000e+00 : f32
    %2 = vector.broadcast %cst : f32 to vector<1x128xf32>
    %c0_i32 = arith.constant 0 : i32
    %3 = arith.cmpi eq, %arg1, %c0_i32 : i32
    %c0_i32_0 = arith.constant 0 : i32
    %4 = arith.cmpi eq, %arg1, %c0_i32_0 : i32
    %c0 = arith.constant 0 : index
    %c0_1 = arith.constant 0 : index
    %c0_2 = arith.constant 0 : index
    %c0_3 = arith.constant 0 : index
    %5 = vector.load %arg2[%c0, %c0_1, %c0_2, %c0_3] : memref<1x3x16x128xf32, #tpu.memory_space<vmem>>, vector<1x1x16x128xf32>
    %6 = vector.shape_cast %5 : vector<1x1x16x128xf32> to vector<16x128xf32>
    %cst_4 = arith.constant 0.256789058 : f32
    %7 = vector.broadcast %cst_4 : f32 to vector<16x128xf32>
    %8 = arith.mulf %7, %6 : vector<16x128xf32>
    %c0_5 = arith.constant 0 : index
    %c1 = arith.constant 1 : index
    %c0_6 = arith.constant 0 : index
    %c0_7 = arith.constant 0 : index
    %9 = vector.load %arg2[%c0_5, %c1, %c0_6, %c0_7] : memref<1x3x16x128xf32, #tpu.memory_space<vmem>>, vector<1x1x16x128xf32>
    %10 = vector.shape_cast %9 : vector<1x1x16x128xf32> to vector<16x128xf32>
    %cst_8 = arith.constant 0.504128933 : f32
    %11 = vector.broadcast %cst_8 : f32 to vector<16x128xf32>
    %12 = arith.mulf %11, %10 : vector<16x128xf32>
    %13 = arith.addf %8, %12 : vector<16x128xf32>
    %c0_9 = arith.constant 0 : index
    %c2 = arith.constant 2 : index
    %c0_10 = arith.constant 0 : index
    %c0_11 = arith.constant 0 : index
    %14 = vector.load %arg2[%c0_9, %c2, %c0_10, %c0_11] : memref<1x3x16x128xf32, #tpu.memory_space<vmem>>, vector<1x1x16x128xf32>
    %15 = vector.shape_cast %14 : vector<1x1x16x128xf32> to vector<16x128xf32>
    %cst_12 = arith.constant 0.0979062467 : f32
    %16 = vector.broadcast %cst_12 : f32 to vector<16x128xf32>
    %17 = arith.mulf %16, %15 : vector<16x128xf32>
    %18 = arith.addf %13, %17 : vector<16x128xf32>
    %c0_13 = arith.constant 0 : index
    %c0_14 = arith.constant 0 : index
    %c0_15 = arith.constant 0 : index
    %c0_16 = arith.constant 0 : index
    %19 = vector.load %arg4[%c0_13, %c0_14, %c0_15, %c0_16] : memref<1x3x8x128xf32, #tpu.memory_space<vmem>>, vector<1x1x8x128xf32>
    %20 = vector.shape_cast %19 : vector<1x1x8x128xf32> to vector<8x128xf32>
    %cst_17 = arith.constant 0.256789058 : f32
    %21 = vector.broadcast %cst_17 : f32 to vector<8x128xf32>
    %22 = arith.mulf %21, %20 : vector<8x128xf32>
    %c0_18 = arith.constant 0 : index
    %c1_19 = arith.constant 1 : index
    %c0_20 = arith.constant 0 : index
    %c0_21 = arith.constant 0 : index
    %23 = vector.load %arg4[%c0_18, %c1_19, %c0_20, %c0_21] : memref<1x3x8x128xf32, #tpu.memory_space<vmem>>, vector<1x1x8x128xf32>
    %24 = vector.shape_cast %23 : vector<1x1x8x128xf32> to vector<8x128xf32>
    %cst_22 = arith.constant 0.504128933 : f32
    %25 = vector.broadcast %cst_22 : f32 to vector<8x128xf32>
    %26 = arith.mulf %25, %24 : vector<8x128xf32>
    %27 = arith.addf %22, %26 : vector<8x128xf32>
    %c0_23 = arith.constant 0 : index
    %c2_24 = arith.constant 2 : index
    %c0_25 = arith.constant 0 : index
    %c0_26 = arith.constant 0 : index
    %28 = vector.load %arg4[%c0_23, %c2_24, %c0_25, %c0_26] : memref<1x3x8x128xf32, #tpu.memory_space<vmem>>, vector<1x1x8x128xf32>
    %29 = vector.shape_cast %28 : vector<1x1x8x128xf32> to vector<8x128xf32>
    %cst_27 = arith.constant 0.0979062467 : f32
    %30 = vector.broadcast %cst_27 : f32 to vector<8x128xf32>
    %31 = arith.mulf %30, %29 : vector<8x128xf32>
    %32 = arith.addf %27, %31 : vector<8x128xf32>
    %33 = vector.extract_strided_slice %32 {offsets = [7, 0], sizes = [1, 128], strides = [1, 1]} : vector<8x128xf32> to vector<1x128xf32>
    %34 = arith.select %3, %2, %33 : vector<1x128xf32>
    %c0_28 = arith.constant 0 : index
    %c0_29 = arith.constant 0 : index
    %c0_30 = arith.constant 0 : index
    %c0_31 = arith.constant 0 : index
    %35 = vector.load %arg5[%c0_28, %c0_29, %c0_30, %c0_31] : memref<1x3x8x128xf32, #tpu.memory_space<vmem>>, vector<1x1x8x128xf32>
    %36 = vector.shape_cast %35 : vector<1x1x8x128xf32> to vector<8x128xf32>
    %cst_32 = arith.constant 0.256789058 : f32
    %37 = vector.broadcast %cst_32 : f32 to vector<8x128xf32>
    %38 = arith.mulf %37, %36 : vector<8x128xf32>
    %c0_33 = arith.constant 0 : index
    %c1_34 = arith.constant 1 : index
    %c0_35 = arith.constant 0 : index
    %c0_36 = arith.constant 0 : index
    %39 = vector.load %arg5[%c0_33, %c1_34, %c0_35, %c0_36] : memref<1x3x8x128xf32, #tpu.memory_space<vmem>>, vector<1x1x8x128xf32>
    %40 = vector.shape_cast %39 : vector<1x1x8x128xf32> to vector<8x128xf32>
    %cst_37 = arith.constant 0.504128933 : f32
    %41 = vector.broadcast %cst_37 : f32 to vector<8x128xf32>
    %42 = arith.mulf %41, %40 : vector<8x128xf32>
    %43 = arith.addf %38, %42 : vector<8x128xf32>
    %c0_38 = arith.constant 0 : index
    %c2_39 = arith.constant 2 : index
    %c0_40 = arith.constant 0 : index
    %c0_41 = arith.constant 0 : index
    %44 = vector.load %arg5[%c0_38, %c2_39, %c0_40, %c0_41] : memref<1x3x8x128xf32, #tpu.memory_space<vmem>>, vector<1x1x8x128xf32>
    %45 = vector.shape_cast %44 : vector<1x1x8x128xf32> to vector<8x128xf32>
    %cst_42 = arith.constant 0.0979062467 : f32
    %46 = vector.broadcast %cst_42 : f32 to vector<8x128xf32>
    %47 = arith.mulf %46, %45 : vector<8x128xf32>
    %48 = arith.addf %43, %47 : vector<8x128xf32>
    %49 = vector.extract_strided_slice %48 {offsets = [0, 0], sizes = [1, 128], strides = [1, 1]} : vector<8x128xf32> to vector<1x128xf32>
    %50 = arith.select %4, %2, %49 : vector<1x128xf32>
    %c15_i32 = arith.constant 15 : i32
    %51 = tpu.dynamic_rotate %18 by %c15_i32 dim 0 : vector<16x128xf32>, i32 -> vector<16x128xf32>
    %c1_i32 = arith.constant 1 : i32
    %52 = tpu.dynamic_rotate %18 by %c1_i32 dim 0 : vector<16x128xf32>, i32 -> vector<16x128xf32>
    %53 = arith.subf %51, %52 : vector<16x128xf32>
    %c127_i32 = arith.constant 127 : i32
    %54 = tpu.dynamic_rotate %18 by %c127_i32 dim 1 : vector<16x128xf32>, i32 -> vector<16x128xf32>
    %c1_i32_43 = arith.constant 1 : i32
    %55 = tpu.dynamic_rotate %18 by %c1_i32_43 dim 1 : vector<16x128xf32>, i32 -> vector<16x128xf32>
    %56 = arith.subf %54, %55 : vector<16x128xf32>
    %c0_i32_44 = arith.constant 0 : i32
    %57 = vector.broadcast %c0_i32_44 : i32 to vector<16x128xi32>
    %58 = arith.cmpi eq, %0, %57 : vector<16x128xi32>
    %59 = vector.extract_strided_slice %18 {offsets = [1, 0], sizes = [1, 128], strides = [1, 1]} : vector<16x128xf32> to vector<1x128xf32>
    %60 = arith.subf %59, %34 : vector<1x128xf32>
    %61 = vector.shape_cast %60 : vector<1x128xf32> to vector<1x128xf32>
    %62 = vector.broadcast %61 : vector<1x128xf32> to vector<16x128xf32>
    %63 = arith.select %58, %62, %53 : vector<16x128xi1>, vector<16x128xf32>
    %c15_i32_45 = arith.constant 15 : i32
    %64 = vector.broadcast %c15_i32_45 : i32 to vector<16x128xi32>
    %65 = arith.cmpi eq, %0, %64 : vector<16x128xi32>
    %66 = vector.extract_strided_slice %18 {offsets = [14, 0], sizes = [1, 128], strides = [1, 1]} : vector<16x128xf32> to vector<1x128xf32>
    %67 = arith.subf %50, %66 : vector<1x128xf32>
    %68 = vector.shape_cast %67 : vector<1x128xf32> to vector<1x128xf32>
    %69 = vector.broadcast %68 : vector<1x128xf32> to vector<16x128xf32>
    %70 = arith.select %65, %69, %63 : vector<16x128xi1>, vector<16x128xf32>
    %c0_i32_46 = arith.constant 0 : i32
    %71 = vector.broadcast %c0_i32_46 : i32 to vector<16x128xi32>
    %72 = arith.cmpi eq, %1, %71 : vector<16x128xi32>
    %73 = vector.extract_strided_slice %18 {offsets = [0, 1], sizes = [16, 1], strides = [1, 1]} : vector<16x128xf32> to vector<16x1xf32>
    %74 = vector.shape_cast %73 : vector<16x1xf32> to vector<16x1xf32>
    %75 = vector.broadcast %74 : vector<16x1xf32> to vector<16x128xf32>
    %76 = arith.select %72, %75, %56 : vector<16x128xi1>, vector<16x128xf32>
    %c127_i32_47 = arith.constant 127 : i32
    %77 = vector.broadcast %c127_i32_47 : i32 to vector<16x128xi32>
    %78 = arith.cmpi eq, %1, %77 : vector<16x128xi32>
    %79 = vector.extract_strided_slice %18 {offsets = [0, 126], sizes = [16, 1], strides = [1, 1]} : vector<16x128xf32> to vector<16x1xf32>
    %cst_48 = arith.constant 0.000000e+00 : f32
    %80 = vector.broadcast %cst_48 : f32 to vector<16x1xf32>
    %81 = arith.subf %80, %79 : vector<16x1xf32>
    %82 = vector.shape_cast %81 : vector<16x1xf32> to vector<16x1xf32>
    %83 = vector.broadcast %82 : vector<16x1xf32> to vector<16x128xf32>
    %84 = arith.select %78, %83, %76 : vector<16x128xi1>, vector<16x128xf32>
    %85 = arith.mulf %70, %70 : vector<16x128xf32>
    %86 = arith.mulf %84, %84 : vector<16x128xf32>
    %87 = arith.addf %85, %86 : vector<16x128xf32>
    %cst_49 = arith.constant 9.99999997E-7 : f32
    %88 = vector.broadcast %cst_49 : f32 to vector<16x128xf32>
    %89 = arith.addf %87, %88 : vector<16x128xf32>
    %90 = math.sqrt %89 : vector<16x128xf32>
    %c0_50 = arith.constant 0 : index
    %c0_51 = arith.constant 0 : index
    %c0_52 = arith.constant 0 : index
    %c0_53 = arith.constant 0 : index
    %91 = vector.load %arg3[%c0_50, %c0_51, %c0_52, %c0_53] : memref<1x3x16x128xf32, #tpu.memory_space<vmem>>, vector<1x1x16x128xf32>
    %92 = vector.shape_cast %91 : vector<1x1x16x128xf32> to vector<16x128xf32>
    %cst_54 = arith.constant 0.256789058 : f32
    %93 = vector.broadcast %cst_54 : f32 to vector<16x128xf32>
    %94 = arith.mulf %93, %92 : vector<16x128xf32>
    %c0_55 = arith.constant 0 : index
    %c1_56 = arith.constant 1 : index
    %c0_57 = arith.constant 0 : index
    %c0_58 = arith.constant 0 : index
    %95 = vector.load %arg3[%c0_55, %c1_56, %c0_57, %c0_58] : memref<1x3x16x128xf32, #tpu.memory_space<vmem>>, vector<1x1x16x128xf32>
    %96 = vector.shape_cast %95 : vector<1x1x16x128xf32> to vector<16x128xf32>
    %cst_59 = arith.constant 0.504128933 : f32
    %97 = vector.broadcast %cst_59 : f32 to vector<16x128xf32>
    %98 = arith.mulf %97, %96 : vector<16x128xf32>
    %99 = arith.addf %94, %98 : vector<16x128xf32>
    %c0_60 = arith.constant 0 : index
    %c2_61 = arith.constant 2 : index
    %c0_62 = arith.constant 0 : index
    %c0_63 = arith.constant 0 : index
    %100 = vector.load %arg3[%c0_60, %c2_61, %c0_62, %c0_63] : memref<1x3x16x128xf32, #tpu.memory_space<vmem>>, vector<1x1x16x128xf32>
    %101 = vector.shape_cast %100 : vector<1x1x16x128xf32> to vector<16x128xf32>
    %cst_64 = arith.constant 0.0979062467 : f32
    %102 = vector.broadcast %cst_64 : f32 to vector<16x128xf32>
    %103 = arith.mulf %102, %101 : vector<16x128xf32>
    %104 = arith.addf %99, %103 : vector<16x128xf32>
    %c0_65 = arith.constant 0 : index
    %c0_66 = arith.constant 0 : index
    %c0_67 = arith.constant 0 : index
    %c0_68 = arith.constant 0 : index
    %105 = vector.load %arg6[%c0_65, %c0_66, %c0_67, %c0_68] : memref<1x3x8x128xf32, #tpu.memory_space<vmem>>, vector<1x1x8x128xf32>
    %106 = vector.shape_cast %105 : vector<1x1x8x128xf32> to vector<8x128xf32>
    %cst_69 = arith.constant 0.256789058 : f32
    %107 = vector.broadcast %cst_69 : f32 to vector<8x128xf32>
    %108 = arith.mulf %107, %106 : vector<8x128xf32>
    %c0_70 = arith.constant 0 : index
    %c1_71 = arith.constant 1 : index
    %c0_72 = arith.constant 0 : index
    %c0_73 = arith.constant 0 : index
    %109 = vector.load %arg6[%c0_70, %c1_71, %c0_72, %c0_73] : memref<1x3x8x128xf32, #tpu.memory_space<vmem>>, vector<1x1x8x128xf32>
    %110 = vector.shape_cast %109 : vector<1x1x8x128xf32> to vector<8x128xf32>
    %cst_74 = arith.constant 0.504128933 : f32
    %111 = vector.broadcast %cst_74 : f32 to vector<8x128xf32>
    %112 = arith.mulf %111, %110 : vector<8x128xf32>
    %113 = arith.addf %108, %112 : vector<8x128xf32>
    %c0_75 = arith.constant 0 : index
    %c2_76 = arith.constant 2 : index
    %c0_77 = arith.constant 0 : index
    %c0_78 = arith.constant 0 : index
    %114 = vector.load %arg6[%c0_75, %c2_76, %c0_77, %c0_78] : memref<1x3x8x128xf32, #tpu.memory_space<vmem>>, vector<1x1x8x128xf32>
    %115 = vector.shape_cast %114 : vector<1x1x8x128xf32> to vector<8x128xf32>
    %cst_79 = arith.constant 0.0979062467 : f32
    %116 = vector.broadcast %cst_79 : f32 to vector<8x128xf32>
    %117 = arith.mulf %116, %115 : vector<8x128xf32>
    %118 = arith.addf %113, %117 : vector<8x128xf32>
    %119 = vector.extract_strided_slice %118 {offsets = [7, 0], sizes = [1, 128], strides = [1, 1]} : vector<8x128xf32> to vector<1x128xf32>
    %120 = arith.select %3, %2, %119 : vector<1x128xf32>
    %c0_80 = arith.constant 0 : index
    %c0_81 = arith.constant 0 : index
    %c0_82 = arith.constant 0 : index
    %c0_83 = arith.constant 0 : index
    %121 = vector.load %arg7[%c0_80, %c0_81, %c0_82, %c0_83] : memref<1x3x8x128xf32, #tpu.memory_space<vmem>>, vector<1x1x8x128xf32>
    %122 = vector.shape_cast %121 : vector<1x1x8x128xf32> to vector<8x128xf32>
    %cst_84 = arith.constant 0.256789058 : f32
    %123 = vector.broadcast %cst_84 : f32 to vector<8x128xf32>
    %124 = arith.mulf %123, %122 : vector<8x128xf32>
    %c0_85 = arith.constant 0 : index
    %c1_86 = arith.constant 1 : index
    %c0_87 = arith.constant 0 : index
    %c0_88 = arith.constant 0 : index
    %125 = vector.load %arg7[%c0_85, %c1_86, %c0_87, %c0_88] : memref<1x3x8x128xf32, #tpu.memory_space<vmem>>, vector<1x1x8x128xf32>
    %126 = vector.shape_cast %125 : vector<1x1x8x128xf32> to vector<8x128xf32>
    %cst_89 = arith.constant 0.504128933 : f32
    %127 = vector.broadcast %cst_89 : f32 to vector<8x128xf32>
    %128 = arith.mulf %127, %126 : vector<8x128xf32>
    %129 = arith.addf %124, %128 : vector<8x128xf32>
    %c0_90 = arith.constant 0 : index
    %c2_91 = arith.constant 2 : index
    %c0_92 = arith.constant 0 : index
    %c0_93 = arith.constant 0 : index
    %130 = vector.load %arg7[%c0_90, %c2_91, %c0_92, %c0_93] : memref<1x3x8x128xf32, #tpu.memory_space<vmem>>, vector<1x1x8x128xf32>
    %131 = vector.shape_cast %130 : vector<1x1x8x128xf32> to vector<8x128xf32>
    %cst_94 = arith.constant 0.0979062467 : f32
    %132 = vector.broadcast %cst_94 : f32 to vector<8x128xf32>
    %133 = arith.mulf %132, %131 : vector<8x128xf32>
    %134 = arith.addf %129, %133 : vector<8x128xf32>
    %135 = vector.extract_strided_slice %134 {offsets = [0, 0], sizes = [1, 128], strides = [1, 1]} : vector<8x128xf32> to vector<1x128xf32>
    %136 = arith.select %4, %2, %135 : vector<1x128xf32>
    %c15_i32_95 = arith.constant 15 : i32
    %137 = tpu.dynamic_rotate %104 by %c15_i32_95 dim 0 : vector<16x128xf32>, i32 -> vector<16x128xf32>
    %c1_i32_96 = arith.constant 1 : i32
    %138 = tpu.dynamic_rotate %104 by %c1_i32_96 dim 0 : vector<16x128xf32>, i32 -> vector<16x128xf32>
    %139 = arith.subf %137, %138 : vector<16x128xf32>
    %c127_i32_97 = arith.constant 127 : i32
    %140 = tpu.dynamic_rotate %104 by %c127_i32_97 dim 1 : vector<16x128xf32>, i32 -> vector<16x128xf32>
    %c1_i32_98 = arith.constant 1 : i32
    %141 = tpu.dynamic_rotate %104 by %c1_i32_98 dim 1 : vector<16x128xf32>, i32 -> vector<16x128xf32>
    %142 = arith.subf %140, %141 : vector<16x128xf32>
    %c0_i32_99 = arith.constant 0 : i32
    %143 = vector.broadcast %c0_i32_99 : i32 to vector<16x128xi32>
    %144 = arith.cmpi eq, %0, %143 : vector<16x128xi32>
    %145 = vector.extract_strided_slice %104 {offsets = [1, 0], sizes = [1, 128], strides = [1, 1]} : vector<16x128xf32> to vector<1x128xf32>
    %146 = arith.subf %145, %120 : vector<1x128xf32>
    %147 = vector.shape_cast %146 : vector<1x128xf32> to vector<1x128xf32>
    %148 = vector.broadcast %147 : vector<1x128xf32> to vector<16x128xf32>
    %149 = arith.select %144, %148, %139 : vector<16x128xi1>, vector<16x128xf32>
    %c15_i32_100 = arith.constant 15 : i32
    %150 = vector.broadcast %c15_i32_100 : i32 to vector<16x128xi32>
    %151 = arith.cmpi eq, %0, %150 : vector<16x128xi32>
    %152 = vector.extract_strided_slice %104 {offsets = [14, 0], sizes = [1, 128], strides = [1, 1]} : vector<16x128xf32> to vector<1x128xf32>
    %153 = arith.subf %136, %152 : vector<1x128xf32>
    %154 = vector.shape_cast %153 : vector<1x128xf32> to vector<1x128xf32>
    %155 = vector.broadcast %154 : vector<1x128xf32> to vector<16x128xf32>
    %156 = arith.select %151, %155, %149 : vector<16x128xi1>, vector<16x128xf32>
    %c0_i32_101 = arith.constant 0 : i32
    %157 = vector.broadcast %c0_i32_101 : i32 to vector<16x128xi32>
    %158 = arith.cmpi eq, %1, %157 : vector<16x128xi32>
    %159 = vector.extract_strided_slice %104 {offsets = [0, 1], sizes = [16, 1], strides = [1, 1]} : vector<16x128xf32> to vector<16x1xf32>
    %160 = vector.shape_cast %159 : vector<16x1xf32> to vector<16x1xf32>
    %161 = vector.broadcast %160 : vector<16x1xf32> to vector<16x128xf32>
    %162 = arith.select %158, %161, %142 : vector<16x128xi1>, vector<16x128xf32>
    %c127_i32_102 = arith.constant 127 : i32
    %163 = vector.broadcast %c127_i32_102 : i32 to vector<16x128xi32>
    %164 = arith.cmpi eq, %1, %163 : vector<16x128xi32>
    %165 = vector.extract_strided_slice %104 {offsets = [0, 126], sizes = [16, 1], strides = [1, 1]} : vector<16x128xf32> to vector<16x1xf32>
    %cst_103 = arith.constant 0.000000e+00 : f32
    %166 = vector.broadcast %cst_103 : f32 to vector<16x1xf32>
    %167 = arith.subf %166, %165 : vector<16x1xf32>
    %168 = vector.shape_cast %167 : vector<16x1xf32> to vector<16x1xf32>
    %169 = vector.broadcast %168 : vector<16x1xf32> to vector<16x128xf32>
    %170 = arith.select %164, %169, %162 : vector<16x128xi1>, vector<16x128xf32>
    %171 = arith.mulf %156, %156 : vector<16x128xf32>
    %172 = arith.mulf %170, %170 : vector<16x128xf32>
    %173 = arith.addf %171, %172 : vector<16x128xf32>
    %cst_104 = arith.constant 9.99999997E-7 : f32
    %174 = vector.broadcast %cst_104 : f32 to vector<16x128xf32>
    %175 = arith.addf %173, %174 : vector<16x128xf32>
    %176 = math.sqrt %175 : vector<16x128xf32>
    %c0_105 = arith.constant 0 : index
    %c0_106 = arith.constant 0 : index
    %c0_107 = arith.constant 0 : index
    %177 = vector.load %arg8[%c0_105, %c0_106, %c0_107] : memref<1x16x128xf32, #tpu.memory_space<vmem>>, vector<1x16x128xf32>
    %178 = vector.shape_cast %177 : vector<1x16x128xf32> to vector<16x128xf32>
    %179 = vector.shape_cast %90 : vector<16x128xf32> to vector<1x16x128xf32>
    tpu.vector_store %arg8[%c0_105, %c0_106, %c0_107], %179 {strides = array<i32>} : memref<1x16x128xf32, #tpu.memory_space<vmem>>, vector<1x16x128xf32>,
    %c0_108 = arith.constant 0 : index
    %c0_109 = arith.constant 0 : index
    %c0_110 = arith.constant 0 : index
    %180 = vector.load %arg9[%c0_108, %c0_109, %c0_110] : memref<1x16x128xf32, #tpu.memory_space<vmem>>, vector<1x16x128xf32>
    %181 = vector.shape_cast %180 : vector<1x16x128xf32> to vector<16x128xf32>
    %182 = vector.shape_cast %176 : vector<16x128xf32> to vector<1x16x128xf32>
    tpu.vector_store %arg9[%c0_108, %c0_109, %c0_110], %182 {strides = array<i32>} : memref<1x16x128xf32, #tpu.memory_space<vmem>>, vector<1x16x128xf32>,
    %183 = arith.subf %90, %176 : vector<16x128xf32>
    %184 = math.absf %183 : vector<16x128xf32>
    %c16_i32 = arith.constant 16 : i32
    %185 = arith.muli %arg1, %c16_i32 : i32
    %186 = vector.broadcast %185 : i32 to vector<16x128xi32>
    %187 = arith.addi %186, %0 : vector<16x128xi32>
    %c16_i32_111 = arith.constant 16 : i32
    %188 = vector.broadcast %c16_i32_111 : i32 to vector<16x128xi32>
    %189 = arith.cmpi slt, %187, %188 : vector<16x128xi32>
    %c16_i32_112 = arith.constant 16 : i32
    %190 = vector.broadcast %c16_i32_112 : i32 to vector<16x128xi32>
    %191 = arith.cmpi slt, %1, %190 : vector<16x128xi32>
    %192 = arith.andi %189, %191 : vector<16x128xi1>
    %cst_113 = arith.constant 0.000000e+00 : f32
    %193 = vector.broadcast %cst_113 : f32 to vector<16x128xf32>
    %194 = arith.select %192, %184, %193 : vector<16x128xi1>, vector<16x128xf32>
    %195 = vector.shape_cast %194 : vector<16x128xf32> to vector<1x16x128xf32>
    %cst_114 = arith.constant dense<0.000000e+00> : vector<1xf32>
    %196 = vector.multi_reduction <add>, %195, %cst_114 [1, 2] : vector<1x16x128xf32> to vector<1xf32>
    %197 = vector.shape_cast %196 : vector<1xf32> to vector<1x1x1xf32>
    %198 = vector.extract %197[0, 0, 0] : f32 from vector<1x1x1xf32>
    %199 = vector.broadcast %198 : f32 to vector<1x1xf32>
    %c0_115 = arith.constant 0 : index
    %c0_116 = arith.constant 0 : index
    %c0_117 = arith.constant 0 : index
    %c0_118 = arith.constant 0 : index
    %200 = vector.load %arg10[%c0_115, %c0_116, %c0_117, %c0_118] : memref<1x1x1x1xf32, #tpu.memory_space<vmem>>, vector<1x1x1x1xf32>
    %201 = vector.shape_cast %200 : vector<1x1x1x1xf32> to vector<1x1xf32>
    %202 = vector.shape_cast %199 : vector<1x1xf32> to vector<1x1x1x1xf32>
    tpu.vector_store %arg10[%c0_115, %c0_116, %c0_117, %c0_118], %202 {strides = array<i32>} : memref<1x1x1x1xf32, #tpu.memory_space<vmem>>, vector<1x1x1x1xf32>,
    return
  }
  func.func @transform_0(%arg0: i32, %arg1: i32) -> (i32, i32, i32, i32) {
    %c0_i32 = arith.constant 0 : i32
    %c0_i32_0 = arith.constant 0 : i32
    %c0_i32_1 = arith.constant 0 : i32
    return %arg0, %c0_i32, %arg1, %c0_i32_0 : i32, i32, i32, i32
  }
  func.func @transform_1(%arg0: i32, %arg1: i32) -> (i32, i32, i32, i32) {
    %c0_i32 = arith.constant 0 : i32
    %c0_i32_0 = arith.constant 0 : i32
    %c0_i32_1 = arith.constant 0 : i32
    return %arg0, %c0_i32, %arg1, %c0_i32_0 : i32, i32, i32, i32
  }
  func.func @transform_2(%arg0: i32, %arg1: i32) -> (i32, i32, i32, i32) {
    %c2_i32 = arith.constant 2 : i32
    %0 = arith.muli %arg1, %c2_i32 : i32
    %c1_i32 = arith.constant 1 : i32
    %1 = arith.subi %0, %c1_i32 : i32
    %c0_i32 = arith.constant 0 : i32
    %2 = arith.maxsi %1, %c0_i32 : i32
    %c0_i32_0 = arith.constant 0 : i32
    %c0_i32_1 = arith.constant 0 : i32
    %c0_i32_2 = arith.constant 0 : i32
    return %arg0, %c0_i32_0, %2, %c0_i32_1 : i32, i32, i32, i32
  }
  func.func @transform_3(%arg0: i32, %arg1: i32) -> (i32, i32, i32, i32) {
    %c1_i32 = arith.constant 1 : i32
    %0 = arith.addi %arg1, %c1_i32 : i32
    %c2_i32 = arith.constant 2 : i32
    %1 = arith.muli %0, %c2_i32 : i32
    %c1_i32_0 = arith.constant 1 : i32
    %2 = arith.minsi %1, %c1_i32_0 : i32
    %c0_i32 = arith.constant 0 : i32
    %c0_i32_1 = arith.constant 0 : i32
    %c0_i32_2 = arith.constant 0 : i32
    return %arg0, %c0_i32, %2, %c0_i32_1 : i32, i32, i32, i32
  }
  func.func @transform_4(%arg0: i32, %arg1: i32) -> (i32, i32, i32, i32) {
    %c2_i32 = arith.constant 2 : i32
    %0 = arith.muli %arg1, %c2_i32 : i32
    %c1_i32 = arith.constant 1 : i32
    %1 = arith.subi %0, %c1_i32 : i32
    %c0_i32 = arith.constant 0 : i32
    %2 = arith.maxsi %1, %c0_i32 : i32
    %c0_i32_0 = arith.constant 0 : i32
    %c0_i32_1 = arith.constant 0 : i32
    %c0_i32_2 = arith.constant 0 : i32
    return %arg0, %c0_i32_0, %2, %c0_i32_1 : i32, i32, i32, i32
  }
  func.func @transform_5(%arg0: i32, %arg1: i32) -> (i32, i32, i32, i32) {
    %c1_i32 = arith.constant 1 : i32
    %0 = arith.addi %arg1, %c1_i32 : i32
    %c2_i32 = arith.constant 2 : i32
    %1 = arith.muli %0, %c2_i32 : i32
    %c1_i32_0 = arith.constant 1 : i32
    %2 = arith.minsi %1, %c1_i32_0 : i32
    %c0_i32 = arith.constant 0 : i32
    %c0_i32_1 = arith.constant 0 : i32
    %c0_i32_2 = arith.constant 0 : i32
    return %arg0, %c0_i32, %2, %c0_i32_1 : i32, i32, i32, i32
  }
  func.func @transform_6(%arg0: i32, %arg1: i32) -> (i32, i32, i32) {
    %c0_i32 = arith.constant 0 : i32
    %c0_i32_0 = arith.constant 0 : i32
    return %arg0, %arg1, %c0_i32 : i32, i32, i32
  }
  func.func @transform_7(%arg0: i32, %arg1: i32) -> (i32, i32, i32) {
    %c0_i32 = arith.constant 0 : i32
    %c0_i32_0 = arith.constant 0 : i32
    return %arg0, %arg1, %c0_i32 : i32, i32, i32
  }
  func.func @transform_8(%arg0: i32, %arg1: i32) -> (i32, i32, i32, i32) {
    %c0_i32 = arith.constant 0 : i32
    %c0_i32_0 = arith.constant 0 : i32
    %c0_i32_1 = arith.constant 0 : i32
    return %arg0, %arg1, %c0_i32, %c0_i32_0 : i32, i32, i32, i32
  }
}

</mosaic_0001>

<bundles_post_ra>
// kernel: tpu_custom_call.1
= control target key start
LH: loop header
LB: loop body
LE: loop exit
PB: predicated region body
PF: predicated region fallthrough
CT: control target
= control target key end

     0   :  { %s2182_s0 = inlined_call_operand.hbm [shape: f32[2,3,16,128], index: 0, kind: input, shape index: {}]   ;;  %s2183_s1 = inlined_call_operand.hbm [shape: f32[2,3,16,128], index: 1, kind: input, shape index: {}]   ;;  %s2184_s2 = inlined_call_operand.hbm [shape: f32[2,3,16,128], index: 2, kind: input, shape index: {}]   ;;  %s2185_s3 = inlined_call_operand.hbm [shape: f32[2,3,16,128], index: 3, kind: input, shape index: {}]   ;;  %s2186_s4 = inlined_call_operand.hbm [shape: f32[2,3,16,128], index: 4, kind: input, shape index: {}]   ;;  %s2187_s5 = inlined_call_operand.hbm [shape: f32[2,3,16,128], index: 5, kind: input, shape index: {}]   ;;  %s2188_s6 = inlined_call_operand.hbm [shape: f32[2,16,128], index: 6, kind: output, shape index: {0}]   ;;  %s2189_s7 = inlined_call_operand.hbm [shape: f32[2,16,128], index: 7, kind: output, shape index: {1}]   ;;  %s2190_s8 = inlined_call_operand.vmem [shape: f32[2,1,1,1], index: 8, kind: output, shape index: {2}]  }
   0x1   :  { %2208 = sst [smem:[#allocation31_spill]] %s2183_s1 }
   0x2   :  { %2209 = sst [smem:[#allocation32_spill]] %s2185_s3 }
   0x3   :  { %2210 = sst [smem:[#allocation33_spill]] %s2188_s6 }
   0x4   :  { %2211 = sst [smem:[#allocation34_spill]] %s2189_s7 }
   0x5   :  { %2212 = sst [smem:[#allocation35_spill]] %s2190_s8 }
   0x6   :  { %14 = vsyncpa [#allocation3], 0 }
   0x7   :  { %16 = vsyncpa [#allocation3 + $0x1], 0 }
   0x8   :  { %17 = vsyncpa [#allocation6], 0 }
   0x9   :  { %19 = vsyncpa [#allocation6 + $0x1], 0 }
   0xa   :  { %20 = vsyncpa [#allocation9], 0 }
   0xb   :  { %22 = vsyncpa [#allocation9 + $0x1], 0 }
   0xc   :  { %23 = vsyncpa [#allocation12], 0 }
   0xd   :  { %25 = vsyncpa [#allocation12 + $0x1], 0 }
   0xe   :  { %26 = vsyncpa [#allocation4], 0 }
   0xf   :  { %28 = vsyncpa [#allocation4 + $0x1], 0 }
  0x10   :  { %29 = vsyncpa [#allocation15], 0 }
  0x11   :  { %31 = vsyncpa [#allocation15 + $0x1], 0  ;;  %s1797_s27 = smov 0   ;;  %s1799_s28 = smov 0  }
  0x12   :  { %s1801_s29 = smov 0   ;;  %s1803_s30 = smov 0  }
  0x13   :  { %s1805_s9 = smov 0   ;;  %s1807_s10 = smov 0  }
  0x14 LB: > { %2213 = sst [smem:[#allocation22_spill]] %s1712_s27  ;;  %s1828_s11 = sadd.s32 4294967295, %s1732_s10   ;;  %s1732_s10 = sphi %s1807_s10, %s37_s10   ;;  %s1728_s9 = sphi %s1805_s9, %s2246_s9   ;;  %s1724_s30 = sphi %s1803_s30, %s2249_s30   ;;  %s1720_s29 = sphi %s1801_s29, %s2244_s29   ;;  %s1716_s28 = sphi %s1799_s28, %s2248_s28   ;;  %s1712_s27 = sphi %s1797_s27, %s2247_s27  }
  0x15   : > { %2214 = sst [smem:[#allocation23_spill]] %s1720_s29  ;;  %s1269_s12 = sadd.s32 4294967294, %s1732_s10  }
  0x16   : > { %2215 = sst [smem:[#allocation24_spill]] %s1724_s30  ;;  %s49_s13 = sadd.s32 1, %s1728_s9 }
  0x17   : > { %2216 = sst [smem:[#allocation25_spill]] %s1728_s9  ;;  %s58_s14 = sadd.s32 1, %s1720_s29 }
  0x18   : > { %2217 = sst [smem:[#allocation26_spill]] %s1732_s10  ;;  %p51_p0 = scmp.ge.s32.totalorder %s49_s13, 2 }
  0x19   : > { %p65_p1 = scmp.ne.s32.totalorder %s1720_s29, %s1716_s28  ;;  %p66_p2 = scmp.eq.s32.totalorder %s1732_s10, 0 }
  0x1a   : > { %p71_p3 = scmp.ne.s32.totalorder %s1716_s28, %s1712_s27  ;;  %s2251_s13 = smov (%p51_p0, %s49_s13), 0 }
  0x1b   : > { %2218 = sst [smem:[#allocation27_spill]] %s2251_s13  ;;  %p1840_p4 = por %p66_p2, %p65_p1 }
  0x1c   : > { %p72_p5 = scmp.eq.s32.totalorder %s1828_s11, 0  ;;  %s53_s16 = ssub.s32 %s1728_s9, %s2251_s13 }
  0x1d   : > { %p269_p6 = scmp.eq.s32.totalorder %s1828_s11, 1  ;;  %p56_p7 = scmp.eq.s32.totalorder %s53_s16, 0 }
  0x1e   : > { %p1848_p8 = por %p72_p5, %p71_p3  ;;  %p275_p10 = scmp.eq.s32.totalorder %s1269_s12, 1 }
  0x1f   : > { %p1852_p9 = por %p269_p6, %p65_p1  ;;  %p1271_p12 = scmp.ge.s32.totalorder %s1732_s10, 2 }
  0x20   : > { %s1857_s19 = scalar_select %p56_p7, %s1720_s29, %s58_s14  }
  0x21   : > { %s2221_s18 = scalar_select %p1852_p9, 1, 0 }
  0x22   : > { %2223 = sst [smem:[#allocation29_spill]] %s1857_s19  ;;  %p1859_p11 = por %p275_p10, %p71_p3 }
  0x23   : > { %2222 = sst [smem:[#allocation28_spill]] %s2221_s18  ;;  %p1368_p13 = scmp.lt.s32.totalorder %s1732_s10, 2 }
  0x24   : > { %s2224_s20 = scalar_select %p1859_p11, 1, 0 }
  0x25   : > { %s1866_s21 = sand.u32 1, %s1720_s29   ;;  %s1870_s23 = smul.u32 768, %s1728_s9 }
  0x26   : > { %2225 = sst [smem:[#allocation30_spill]] %s2224_s20  ;;  %s2194_s22 = smul.u32 48, %s1866_s21 }
  0x27   : > { %p1874_p0 = pnand %p1368_p13, %p1840_p4  ;;  %s2195_s25 = sand.u32 1, %s1732_s10  }
  0x28   : > { %s2227_s1 = sld [smem:[#allocation31_spill]]  ;;  %s378_s16 = scalar_lea.vmem [#allocation5], %s2194_s22 }
  0x29   : > { %s387_s13 = sshll.u32 %s378_s16, 4  ;;  %s1886_s19 = smul.u32 24, %s1866_s21  ;;  %s388_s13 = int_to_ptr.vmem [resolvable:$true] %s387_s13 }
  0x2a   : > { %s1890_s9 = scalar_lea.sflag [#allocation6], %s2195_s25  ;;  %p1894_p1 = pneg %p1874_p0 }
  0x2b   : > { %s1455_s29 = scalar_lea.vmem %s388_s13, 768  ;;  %s1734_s26 = smov [#allocation5]  }
  0x2c   : > { %p1456_p2 = scmp.ne.s32.totalorder %s388_s13, %s1455_s29  ;;  %s1460_s12 = sshll.u32 %s1734_s26, 4  ;;  %s1461_s12 = int_to_ptr.vmem [resolvable:$false] %s1460_s12 }
  0x2d   : > { %s1462_s16 = scalar_lea.vmem %s1461_s12, 1536  ;;  %p1463_p5 = scmp.lt.s32.totalorder %s388_s13, %s1461_s12 }
  0x2e   : > { %s386_s14 = scalar_lea.hbm %s2227_s1, %s1870_s23  ;;  %p1458_p3 = pnand %p1456_p2, %p1894_p1 }
  0x2f   : > { %p1464_p6 = scmp.lt.s32.totalorder %s1462_s16, %s1455_s29 }
  0x30   : > { %p1459_p4 = pneg %p1458_p3 }
  0x31   : > { %p1465_p7 = por %p1464_p6, %p1463_p5 }
  0x33   : > { %p1466_p10 = pnand %p1465_p7, %p1459_p4 }
  0x35   : > { %1469 = shalt.err (!%p1466_p10)
}
  0x36   : > { %s2200_s22 = smov 128   ;;  %s1736_s25 = smov 8  }
  0x37   : > { %1348 = dma.hbm_to_vmem [thread:$0]  (!%p1874_p0), %s386_s14, 768, %s388_s13, %s1890_s9, %s2200_s22, %s2200_s22, %s1736_s25  }
  0x38   : > { %p1278_p13 = scmp.ge.s32.totalorder %s1732_s10, 1  ;;  %p499_p2 = scmp.lt.s32.totalorder %s1732_s10, 3 }
  0x39   : > { %s2202_s29 = sadd.s32 128, %s1870_s23  ;;  %s2230_s3 = sld [smem:[#allocation32_spill]] }
  0x3a   : > { %p1909_p3 = pnand %p1278_p13, %p499_p2  ;;  %s427_s20 = scalar_lea.vmem [#allocation8], %s1886_s19 }
  0x3b   : > { %s439_s27 = sshll.u32 %s427_s20, 4  ;;  %s2231_s8 = sand.u32 1, %s1732_s10   ;;  %s440_s27 = int_to_ptr.vmem [resolvable:$true] %s439_s27 }
  0x3c   : > { %s1921_s7 = scalar_lea.sflag [#allocation9], %s2231_s8  ;;  %s1483_s6 = scalar_lea.vmem %s440_s27, 384 }
  0x3d   : > { %p1484_p4 = scmp.ne.s32.totalorder %s440_s27, %s1483_s6  ;;  %s1737_s13 = smov [#allocation8]  }
  0x3e   : > { %s1488_s14 = sshll.u32 %s1737_s13, 4  ;;  %s1489_s14 = int_to_ptr.vmem [resolvable:$false] %s1488_s14 }
  0x3f   : > { %s438_s1 = scalar_lea.hbm %s2230_s3, %s2202_s29  ;;  %p1486_p5 = pnand %p1484_p4, %p1894_p1 }
  0x40   : > { %s1490_s22 = scalar_lea.vmem %s1489_s14, 768  ;;  %p1491_p7 = scmp.lt.s32.totalorder %s440_s27, %s1489_s14 }
  0x41   : > { %p1487_p6 = pneg %p1486_p5  ;;  %p1492_p10 = scmp.lt.s32.totalorder %s1490_s22, %s1483_s6 }
  0x43   : > { %p1493_p13 = por %p1492_p10, %p1491_p7 }
  0x45   : > { %p1494_p2 = pnand %p1493_p13, %p1487_p6 }
  0x47   : > { %1497 = shalt.err (!%p1494_p2)
}
  0x48   : > { %s1738_s12 = smov 256   ;;  %s2232_s8 = smov 128  }
  0x49   : > { %1354 = dma.hbm_to_vmem [thread:$0]  (!%p1874_p0), %s438_s1, 384, %s440_s27, %s1921_s7, %s1738_s12, %s2232_s8, %s1736_s25  }
  0x4a   : > { %s363_s13 = scalar_lea.hbm %s2182_s0, %s1870_s23  ;;  %s2233_s6 = smul.u32 48, %s1866_s21 }
  0x4b   : > { %s352_s29 = scalar_lea.sflag [#allocation3], %s1866_s21  ;;  %s1739_s10 = smov [#allocation2]  }
  0x4c   : > { %s355_s22 = scalar_lea.vmem [#allocation2], %s2233_s6  ;;  %s1516_s18 = sshll.u32 %s1739_s10, 4  ;;  %s1517_s18 = int_to_ptr.vmem [resolvable:$false] %s1516_s18 }
  0x4d   : > { %s364_s14 = sshll.u32 %s355_s22, 4  ;;  %s1518_s30 = scalar_lea.vmem %s1517_s18, 1536  ;;  %s365_s14 = int_to_ptr.vmem [resolvable:$true] %s364_s14 }
  0x4e   : > { %s1511_s3 = scalar_lea.vmem %s365_s14, 768  ;;  %p1519_p7 = scmp.lt.s32.totalorder %s365_s14, %s1517_s18 }
  0x4f   : > { %p1512_p4 = scmp.ne.s32.totalorder %s365_s14, %s1511_s3  ;;  %p1520_p10 = scmp.lt.s32.totalorder %s1518_s30, %s1511_s3 }
  0x51   : > { %p1514_p5 = pnand %p1512_p4, %p1894_p1  ;;  %p1521_p13 = por %p1520_p10, %p1519_p7 }
  0x53   : > { %p1515_p6 = pneg %p1514_p5 }
  0x55   : > { %p1522_p2 = pnand %p1521_p13, %p1515_p6 }
  0x57   : > { %1525 = shalt.err (!%p1522_p2)
}
  0x58   : > { %1345 = dma.hbm_to_vmem [thread:$0]  (!%p1874_p0), %s363_s13, 768, %s365_s14, %s352_s29, %s2232_s8, %s2232_s8, %s1736_s25  }
  0x59   : > { %s412_s10 = scalar_lea.hbm %s2184_s2, %s1870_s23  ;;  %s401_s20 = scalar_lea.vmem [#allocation7], %s1886_s19 }
  0x5a   : > { %s413_s16 = sshll.u32 %s401_s20, 4  ;;  %s1740_s30 = smov [#allocation7]   ;;  %s414_s16 = int_to_ptr.vmem [resolvable:$true] %s413_s16 }
  0x5b   : > { %s1539_s3 = scalar_lea.vmem %s414_s16, 384  ;;  %s1544_s18 = sshll.u32 %s1740_s30, 4  ;;  %s1545_s18 = int_to_ptr.vmem [resolvable:$false] %s1544_s18 }
  0x5c   : > { %p1540_p4 = scmp.ne.s32.totalorder %s414_s16, %s1539_s3  ;;  %s1546_s6 = scalar_lea.vmem %s1545_s18, 768 }
  0x5d   : > { %p1547_p7 = scmp.lt.s32.totalorder %s414_s16, %s1545_s18  ;;  %p1548_p10 = scmp.lt.s32.totalorder %s1546_s6, %s1539_s3 }
  0x5e   : > { %p1542_p5 = pnand %p1540_p4, %p1894_p1 }
  0x5f   : > { %p1549_p13 = por %p1548_p10, %p1547_p7 }
  0x60   : > { %p1543_p6 = pneg %p1542_p5 }
  0x62   : > { %p1550_p2 = pnand %p1549_p13, %p1543_p6 }
  0x64   : > { %1553 = shalt.err (!%p1550_p2)
}
  0x65   : > { %1351 = dma.hbm_to_vmem [thread:$0]  (!%p1874_p0), %s412_s10, 384, %s414_s16, %s1890_s9, %s1738_s12, %s2232_s8, %s1736_s25  }
  0x66   : > { %s464_s22 = scalar_lea.hbm %s2186_s4, %s1870_s23  ;;  %s453_s14 = scalar_lea.vmem [#allocation10], %s1886_s19 }
  0x67   : > { %s465_s1 = sshll.u32 %s453_s14, 4  ;;  %s1741_s20 = smov [#allocation10]   ;;  %s466_s1 = int_to_ptr.vmem [resolvable:$true] %s465_s1 }
  0x68   : > { %s1567_s27 = scalar_lea.vmem %s466_s1, 384  ;;  %s1572_s3 = sshll.u32 %s1741_s20, 4  ;;  %s1573_s3 = int_to_ptr.vmem [resolvable:$false] %s1572_s3 }
  0x69   : > { %p1568_p4 = scmp.ne.s32.totalorder %s466_s1, %s1567_s27  ;;  %s1574_s30 = scalar_lea.vmem %s1573_s3, 768 }
  0x6a   : > { %p1575_p7 = scmp.lt.s32.totalorder %s466_s1, %s1573_s3  ;;  %p1576_p10 = scmp.lt.s32.totalorder %s1574_s30, %s1567_s27 }
  0x6b   : > { %p1570_p5 = pnand %p1568_p4, %p1894_p1 }
  0x6c   : > { %p1577_p13 = por %p1576_p10, %p1575_p7 }
  0x6d   : > { %p1571_p6 = pneg %p1570_p5 }
  0x6f   : > { %p1578_p2 = pnand %p1577_p13, %p1571_p6 }
  0x71   : > { %1581 = shalt.err (!%p1578_p2)
}
  0x72   : > { %1357 = dma.hbm_to_vmem [thread:$0]  (!%p1874_p0), %s464_s22, 384, %s466_s1, %s1921_s7, %s1738_s12, %s2232_s8, %s1736_s25  }
  0x73   : > { %s2234_s9 = sadd.s32 128, %s1870_s23  ;;  %s479_s6 = scalar_lea.vmem [#allocation11], %s1886_s19 }
  0x74   : > { %s490_s18 = scalar_lea.hbm %s2187_s5, %s2234_s9  ;;  %s491_s29 = sshll.u32 %s479_s6, 4  ;;  %s492_s29 = int_to_ptr.vmem [resolvable:$true] %s491_s29 }
  0x75   : > { %s476_s13 = scalar_lea.sflag [#allocation12], %s1866_s21  ;;  %s1595_s14 = scalar_lea.vmem %s492_s29, 384 }
  0x76   : > { %p1596_p4 = scmp.ne.s32.totalorder %s492_s29, %s1595_s14  ;;  %s1742_s27 = smov [#allocation11]  }
  0x77   : > { %s1600_s20 = sshll.u32 %s1742_s27, 4  ;;  %s1601_s20 = int_to_ptr.vmem [resolvable:$false] %s1600_s20 }
  0x78   : > { %p1598_p5 = pnand %p1596_p4, %p1894_p1  ;;  %s1602_s3 = scalar_lea.vmem %s1601_s20, 768 }
  0x79   : > { %p1603_p7 = scmp.lt.s32.totalorder %s492_s29, %s1601_s20  ;;  %p1604_p10 = scmp.lt.s32.totalorder %s1602_s3, %s1595_s14 }
  0x7a   : > { %p1599_p6 = pneg %p1598_p5 }
  0x7b   : > { %p1605_p13 = por %p1604_p10, %p1603_p7 }
  0x7d   : > { %p1606_p2 = pnand %p1605_p13, %p1599_p6 }
  0x7f   : > { %1609 = shalt.err (!%p1606_p2)
}
  0x80   : > { %1360 = dma.hbm_to_vmem [thread:$0]  (!%p1874_p0), %s490_s18, 384, %s492_s29, %s476_s13, %s1738_s12, %s2232_s8, %s1736_s25  }
  0x81   : > { %503 = sbr.rel (%p1909_p3) target bundleno = 541 (0x21d), region = 44  ;;  %s1988_s7 = sand.u32 (!%p1909_p3), 1, %s1716_s28  }
  0x82   : > { %s1323_s19 = smul.u32 (!%p1909_p3), 48, %s1988_s7  ;;  %s506_s21 = scalar_lea.sflag (!%p1909_p3), [#allocation3], %s1988_s7 }
  0x84   : > { %s1992_s23 = scalar_lea.vmem (!%p1909_p3), [#allocation2], %s1323_s19 }
  0x86   : > { %1687 = dma.done.wait (%p1848_p8), %s506_s21, 768  }
  0x87   : > { %1689 = vsyncadd (%p1848_p8), %s506_s21, 4294966528  ;;  %s514_s24 = sand.u32 1, %s1828_s11   ;;  %s518_s15 = scalar_lea.vmem [#allocation5], %s1323_s19 }
  0x88   : > { %s515_s25 = scalar_lea.sflag [#allocation6], %s514_s24 }
  0x89   : > { %1691 = dma.done.wait (%p1848_p8), %s515_s25, 1152  }
  0x8a   : > { %1693 = vsyncadd (%p1848_p8), %s515_s25, 4294966144  ;;  %s533_s26 = scalar_lea.sflag [#allocation9], %s514_s24 }
  0x8b   : > { %1695 = dma.done.wait (%p1848_p8), %s533_s26, 768  }
  0x8c   : > { %1697 = vsyncadd (%p1848_p8), %s533_s26, 4294966528  ;;  %s551_s12 = scalar_lea.sflag [#allocation12], %s1988_s7 }
  0x8d   : > { %1699 = dma.done.wait (%p1848_p8), %s551_s12, 384  }
  0x8e   : > { %1701 = vsyncadd (%p1848_p8), %s551_s12, 4294966912  ;;  %v1743_v0 = vmov 1   ;;  %v793_v1 = vld [vmem:[%s518_s15] sm:$0xff]  ;;  %v1289_v2 = vld [vmem:[%s518_s15 + $0x10] sm:$0xff]  ;;  %s1744_s11 = smov 127   ;;  %v1745_v35 = vmov 126   ;;  %v649_v38 = vlaneseq }
  0x8f   : > { %1431 = vset.pattern.permute.xlu1 %v1743_v0  ;;  %1430 = vset.pattern.permute.xlu0 %v1743_v0  ;;  %v1291_v3 = vld [vmem:[%s518_s15 + $0x20] sm:$0xff]  ;;  %v795_v4 = vmul.f32 0.25678906, %v793_v1  ;;  %v800_v5 = vmul.f32 0.50412893, %v1289_v2  ;;  %v1281_v8 = vld [vmem:[%s1992_s23 + $0x10] sm:$0xff] }
  0x90   : > { %v807_v6 = vmul.f32 0.09790625, %v1291_v3  ;;  %v655_v7 = vld [vmem:[%s1992_s23] sm:$0xff]  ;;  %v662_v12 = vmul.f32 0.50412893, %v1281_v8  ;;  %v794_v14 = vld [vmem:[%s518_s15 + $0x8] sm:$0xff] }
  0x91   : > { %v1283_v9 = vld [vmem:[%s1992_s23 + $0x20] sm:$0xff]  ;;  %v802_v10 = vadd.f32 %v800_v5, %v795_v4  ;;  %v657_v11 = vmul.f32 0.25678906, %v655_v7  ;;  %v1290_v15 = vld [vmem:[%s518_s15 + $0x18] sm:$0xff]  ;;  %v1292_v16 = vld [vmem:[%s518_s15 + $0x28] sm:$0xff]  ;;  %v650_v41 = vshrl.u32 %v649_v38, 7 }
  0x92   : > { %v669_v13 = vmul.f32 0.09790625, %v1283_v9  ;;  %v796_v19 = vmul.f32 0.25678906, %v794_v14  ;;  %v801_v20 = vmul.f32 0.50412893, %v1290_v15 }
  0x93   : > { %v2015_v17 = vadd.f32 %v807_v6, %v802_v10  ;;  %v664_v18 = vadd.f32 %v662_v12, %v657_v11  ;;  %v656_v21 = vld [vmem:[%s1992_s23 + $0x8] sm:$0xff]  ;;  %v1282_v22 = vld [vmem:[%s1992_s23 + $0x18] sm:$0xff]  ;;  %v808_v23 = vmul.f32 0.09790625, %v1292_v16  ;;  %v1746_v42 = vmov 0.0   ;;  %s1747_s17 = smov 1  }
  0x94   : > { %v658_v24 = vmul.f32 0.25678906, %v656_v21  ;;  %v663_v25 = vmul.f32 0.50412893, %v1282_v22  ;;  %v803_v27 = vadd.f32 %v801_v20, %v796_v19  ;;  %v1284_v28 = vld [vmem:[%s1992_s23 + $0x28] sm:$0xff]  ;;  %v723_v43 = vrot.slane %v1746_v42, 6 }
  0x95   : > { %875 = vperm.xlu1 %1431, %v2015_v17   ;;  %v671_v26 = vadd.f32 %v669_v13, %v664_v18  ;;  %v670_v30 = vmul.f32 0.09790625, %v1284_v28  ;;  %v884_v37 = vsub.f32 0.0, %v2015_v17  ;;  %vm700_vm0 = vcmp.lt.s32.totalorder %v650_v41, 7  ;;  %s1279_s8 = sshll.u32 %s1988_s7, 4  ;;  %s2235_s30 = sld [smem:[#allocation24_spill]] }
  0x96   : > { %v665_v29 = vadd.f32 %v663_v25, %v658_v24  ;;  %v2021_v31 = vadd.f32 %v808_v23, %v803_v27  ;;  %vm705_vm1 = vcmp.lt.s32.totalorder %v650_v41, 1  ;;  %v728_v47 = vsub.s32 1, %v650_v41  ;;  %s2079_s22 = scalar_lea.vmem [#allocation13], %s1279_s8  ;;  %s614_s1 = scalar_lea.vmem [#allocation14], %s1279_s8 }
  0x97   : > { %747 = vperm.xlu0 %1430, %v671_v26   ;;  %v757_v33 = vsub.f32 0.0, %v671_v26  ;;  %v698_v44 = vrot.slane %v671_v26, 1  ;;  %v703_v45 = vrot.slane %v671_v26, 7  ;;  %v725_v51 = vsub.f32 %v671_v26, %v723_v43  ;;  %s979_s10 = sshll.u32 %s2079_s22, 4  ;;  %s997_s16 = sshll.u32 %s614_s1, 4  ;;  %s2085_s10 = int_to_ptr.vmem [resolvable:$true] %s979_s10  ;;  %s2087_s16 = int_to_ptr.vmem [resolvable:$true] %s997_s16 }
  0x98   : > { %v672_v32 = vadd.f32 %v670_v30, %v665_v29  ;;  %v885_v36 = vsub.f32 0.0, %v2021_v31  ;;  %v651_v52 = vadd.s32 8, %v650_v41  ;;  %vm720_vm2 = vcmp.eq.s32.totalorder %v650_v41, 0  ;;  %s2237_s13 = sld [smem:[#allocation33_spill]]  ;;  %s953_s27 = scalar_lea.sflag [#allocation4], %s1988_s7 }
  0x99   : > { %879 = vperm.xlu1 %1431, %v2021_v31   ;;  %v740_v54 = vsub.s32 0, %v650_v41  ;;  %v729_v57 = vrot.slane %v725_v51, %v728_v47  ;;  %v833_v62 = vrot.slane %v2015_v17, 1  ;;  %v834_v63 = vrot.slane %v2021_v31, 1  ;;  %s1610_s20 = scalar_lea.vmem %s2085_s10, 256  ;;  %s1748_s3 = smov [#allocation13]  }
  0x9a   : > { %v758_v34 = vsub.f32 0.0, %v672_v32  ;;  %v699_v39 = vrot.slane %v672_v32, 1  ;;  %v704_v40 = vrot.slane %v672_v32, 7  ;;  %v735_v46 = vrot.slane %v672_v32, 6  ;;  %p1611_p8 = scmp.ne.s32.totalorder %s2085_s10, %s1610_s20  ;;  %s1614_s19 = sshll.u32 %s1748_s3, 4  ;;  %s1615_s19 = int_to_ptr.vmem [resolvable:$false] %s1614_s19 }
  0x9b   : > { %751 = vperm.xlu0 %1430, %v672_v32   ;;  %vm733_vm3 = vcmp.eq.s32.totalorder %v651_v52, 15  ;;  %v837_v0 = vrot.slane %v2015_v17, 7  ;;  %v838_v1 = vrot.slane %v2021_v31, 7  ;;  %v856_v2 = vsub.f32 %v2015_v17, %v723_v43  ;;  %s1309_s18 = sshll.u32 %s2235_s30, 8  ;;  %s1616_s21 = scalar_lea.vmem %s1615_s19, 512 }
  0x9c   : > { %v701_v48 = vsel %vm700_vm0, %v698_v44, %v699_v39  ;;  %v707_v49 = vsel %vm705_vm1, %v704_v40, %v703_v45  ;;  %v737_v53 = vsub.f32 0.0, %v735_v46  ;;  %v702_v55 = vsel %vm700_vm0, %v699_v39, %v698_v44  ;;  %p1612_p0 = pnand %p1611_p8, %p1852_p9  ;;  %p1617_p3 = scmp.lt.s32.totalorder %s2085_s10, %s1615_s19 }
  0x9d   : > { %710 = vrot.lane.b32.xlu1 %v671_v26, %s1744_s11  ;;  %v708_v50 = vsub.f32 %v701_v48, %v707_v49  ;;  %v706_v56 = vsel %vm705_vm1, %v703_v45, %v704_v40  ;;  %v835_v3 = vsel %vm700_vm0, %v833_v62, %v834_v63  ;;  %v864_v4 = vrot.slane %v2021_v31, 6  ;;  %p1618_p4 = scmp.lt.s32.totalorder %s1616_s21, %s1610_s20 }
  0x9e   : > { %1433 = vset.pattern.permute.xlu1 %v1745_v35  ;;  %v709_v58 = vsub.f32 %v702_v55, %v706_v56  ;;  %v741_v59 = vrot.slane %v737_v53, %v740_v54  ;;  %v840_v5 = vsel %vm705_vm1, %v838_v1, %v837_v0  ;;  %v860_v6 = vrot.slane %v856_v2, %v728_v47  ;;  %s2095_s14 = scalar_lea.hbm %s2237_s13, %s1309_s18  ;;  %p1613_p1 = pneg %p1612_p0 }
  0x9f   : > { %1432 = vset.pattern.permute.xlu0 %v1745_v35  ;;  %v730_v60 = vsel %vm720_vm2, %v729_v57, %v708_v50  ;;  %v836_v7 = vsel %vm700_vm0, %v834_v63, %v833_v62  ;;  %v839_v8 = vsel %vm705_vm1, %v837_v0, %v838_v1  ;;  %v841_v9 = vsub.f32 %v835_v3, %v840_v5  ;;  %p1619_p5 = por %p1618_p4, %p1617_p3 }
  0xa0   : > { %761 = vperm.xlu0 %1432, %v757_v33   ;;  %v743_v61 = vsel %vm733_vm3, %v741_v59, %v709_v58  ;;  %v842_v10 = vsub.f32 %v836_v7, %v839_v8  ;;  %v866_v11 = vsub.f32 0.0, %v864_v4  ;;  %v2058_v24 = vand.u32 127, %v649_v38 }
  0xa1   : > { %766 = vperm.xlu1 %1433, %v758_v34   ;;  %v861_v12 = vsel %vm720_vm2, %v860_v6, %v841_v9  ;;  %v771_v29 = vmul.f32 %v730_v60, %v730_v60  ;;  %p1620_p6 = pnand %p1619_p5, %p1613_p1 }
  0xa2   : > { %v870_v13 = vrot.slane %v866_v11, %v740_v54  ;;  %vm744_vm4 = vcmp.eq.s32.totalorder %v2058_v24, 0  ;;  %vm756_vm5 = vcmp.eq.s32.totalorder %v2058_v24, 127  ;;  %v898_v45 = vmul.f32 %v861_v12, %v861_v12 }
  0xa3   : > { %vm934_vm14 = vcmp.lt.s32.totalorder %v2058_v24, 16 }
  0xa4   : > { %893 = vperm.xlu0 %1432, %v885_v36   ;;  %v872_v14 = vsel %vm733_vm3, %v870_v13, %v842_v10  ;;  %v772_v36 = vmul.f32 %v743_v61, %v743_v61 }
  0xa5   : > { %888 = vperm.xlu1 %1433, %v884_v37   ;;  %v899_v52 = vmul.f32 %v872_v14, %v872_v14 }
  0xa8   : > { %712 = vrot.lane.b32.xlu0 %v672_v32, %s1744_s11 }
  0xa9   : > { %714 = vrot.lane.b32.xlu1 %v671_v26, %s1747_s17 }
  0xac   : > { %716 = vrot.lane.b32.xlu0 %v672_v32, %s1747_s17 }
  0xad   : > { %843 = vrot.lane.b32.xlu1 %v2015_v17, %s1744_s11 }
  0xb0   : > { %845 = vrot.lane.b32.xlu0 %v2021_v31, %s1744_s11 }
  0xb1   : > { %847 = vrot.lane.b32.xlu1 %v2015_v17, %s1747_s17 }
  0xb4   : > { %849 = vrot.lane.b32.xlu0 %v2021_v31, %s1747_s17 }
 0x110   : > { %v876_v15 = vpop.permute.xlu1 %875 }
 0x112   : > { %v748_v16 = vpop.permute.xlu0 %747 }
 0x114   : > { %v880_v18 = vpop.permute.xlu1 %879 }
 0x116   : > { %v752_v19 = vpop.permute.xlu0 %751 }
 0x118   : > { %v711_v20 = vpop.permute.xlu1 %710 }
 0x11b   : > { %v762_v21 = vpop.permute.xlu0 %761 }
 0x11c   : > { %v767_v22 = vpop.permute.xlu1 %766 }
 0x11f   : > { %v894_v23 = vpop.permute.xlu0 %893 }
 0x120   : > { %v889_v17 = vpop.permute.xlu1 %888 }
 0x123   : > { %v713_v25 = vpop.permute.xlu0 %712 }
 0x124   : > { %v715_v26 = vpop.permute.xlu1 %714 }
 0x125   : > { %v718_v27 = vsub.f32 %v711_v20, %v715_v26 }
 0x127   : > { %v754_v28 = vsel %vm744_vm4, %v748_v16, %v718_v27  ;;  %v717_v30 = vpop.permute.xlu0 %716 }
 0x128   : > { %v769_v31 = vsel %vm756_vm5, %v762_v21, %v754_v28  ;;  %v719_v32 = vsub.f32 %v713_v25, %v717_v30  ;;  %v844_v33 = vpop.permute.xlu1 %843 }
 0x129   : > { %v773_v34 = vmul.f32 %v769_v31, %v769_v31 }
 0x12a   : > { %v755_v35 = vsel %vm744_vm4, %v752_v19, %v719_v32 }
 0x12b   : > { %v775_v37 = vadd.f32 %v773_v34, %v771_v29  ;;  %v770_v38 = vsel %vm756_vm5, %v767_v22, %v755_v35  ;;  %v846_v39 = vpop.permute.xlu0 %845 }
 0x12c   : > { %v774_v40 = vmul.f32 %v770_v38, %v770_v38  ;;  %v848_v41 = vpop.permute.xlu1 %847 }
 0x12d   : > { %v777_v42 = vadd.f32 1e-06, %v775_v37  ;;  %v851_v43 = vsub.f32 %v844_v33, %v848_v41 }
 0x12e   : > { %v776_v44 = vadd.f32 %v774_v40, %v772_v36 }
 0x12f   : > { %v882_v46 = vsel %vm744_vm4, %v876_v15, %v851_v43  ;;  %v850_v47 = vpop.permute.xlu0 %849  ;;  %1434 = vrsqrt.f32 %v777_v42  ;;  %vm781_vm6 = vcmp.eq.f32.partialorder %v777_v42, inf  ;;  %v784_v62 = vand.u32 2147483648, %v777_v42 }
 0x130   : > { %v778_v48 = vadd.f32 1e-06, %v776_v44  ;;  %v896_v49 = vsel %vm756_vm5, %v889_v17, %v882_v46  ;;  %v852_v50 = vsub.f32 %v846_v39, %v850_v47  ;;  %vm783_vm7 = vcmp.eq.f32.partialorder %v777_v42, 0.0 }
 0x131   : > { %v900_v51 = vmul.f32 %v896_v49, %v896_v49 }
 0x132   : > { %v883_v53 = vsel %vm744_vm4, %v880_v18, %v852_v50  ;;  %1436 = vrsqrt.f32 %v778_v48  ;;  %vm788_vm8 = vcmp.eq.f32.partialorder %v778_v48, inf  ;;  %v791_v3 = vand.u32 2147483648, %v778_v48 }
 0x133   : > { %v902_v54 = vadd.f32 %v900_v51, %v898_v45  ;;  %v897_v55 = vsel %vm756_vm5, %v894_v23, %v883_v53  ;;  %vm790_vm9 = vcmp.eq.f32.partialorder %v778_v48, 0.0 }
 0x134   : > { %v901_v56 = vmul.f32 %v897_v55, %v897_v55 }
 0x135   : > { %v904_v57 = vadd.f32 1e-06, %v902_v54 }
 0x136   : > { %v903_v58 = vadd.f32 %v901_v56, %v899_v52 }
 0x137   : > { %1438 = vrsqrt.f32 %v904_v57  ;;  %vm908_vm10 = vcmp.eq.f32.partialorder %v904_v57, inf  ;;  %v911_v8 = vand.u32 2147483648, %v904_v57  ;;  %vm910_vm11 = vcmp.eq.f32.partialorder %v904_v57, 0.0 }
 0x138   : > { %v905_v59 = vadd.f32 1e-06, %v903_v58 }
 0x13a   : > { %1440 = vrsqrt.f32 %v905_v59  ;;  %vm915_vm12 = vcmp.eq.f32.partialorder %v905_v59, inf  ;;  %v918_v13 = vand.u32 2147483648, %v905_v59  ;;  %vm917_vm13 = vcmp.eq.f32.partialorder %v905_v59, 0.0 }
 0x13c   : > { %v1435_v60 = vpop.eup %1434 }
 0x13d   : > { %v780_v61 = vmul.f32 %v1435_v60, %v777_v42 }
 0x13f   : > { %v1437_v63 = vpop.eup %1436  ;;  %v782_v0 = vsel %vm781_vm6, %v777_v42, %v780_v61 }
 0x140   : > { %v785_v1 = vsel %vm783_vm7, %v784_v62, %v782_v0  ;;  %v787_v2 = vmul.f32 %v1437_v63, %v778_v48 }
 0x141   : > { %920 = vst [vmem:[%s2079_s22] sm:$0xff] %v785_v1 }
 0x142   : > { %v789_v4 = vsel %vm788_vm8, %v778_v48, %v787_v2 }
 0x143   : > { %v792_v5 = vsel %vm790_vm9, %v791_v3, %v789_v4 }
 0x144   : > { %v1439_v6 = vpop.eup %1438  ;;  %921 = vst [vmem:[%s2079_s22 + $0x8] sm:$0xff] %v792_v5 }
 0x145   : > { %v907_v7 = vmul.f32 %v1439_v6, %v904_v57 }
 0x147   : > { %v1441_v9 = vpop.eup %1440  ;;  %v909_v10 = vsel %vm908_vm10, %v904_v57, %v907_v7 }
 0x148   : > { %v912_v11 = vsel %vm910_vm11, %v911_v8, %v909_v10  ;;  %v914_v12 = vmul.f32 %v1441_v9, %v905_v59 }
 0x149   : > { %922 = vst [vmem:[%s614_s1] sm:$0xff] %v912_v11  ;;  %v924_v14 = vsub.f32 %v785_v1, %v912_v11 }
 0x14a   : > { %v916_v15 = vsel %vm915_vm12, %v905_v59, %v914_v12 }
 0x14b   : > { %v919_v16 = vsel %vm917_vm13, %v918_v13, %v916_v15  ;;  %v926_v18 = vand.u32 2147483647, %v924_v14 }
 0x14c   : > { %923 = vst [vmem:[%s614_s1 + $0x8] sm:$0xff] %v919_v16  ;;  %v925_v19 = vsub.f32 %v792_v5, %v919_v16 }
 0x14d   : > { %v937_v21 = vsel %vm934_vm14, %v926_v18, 0.0 }
 0x14e   : > { %v927_v20 = vand.u32 2147483647, %v925_v19 }
 0x150   : > { %v938_v22 = vsel %vm934_vm14, %v927_v20, 0.0 }
 0x151   : > { %v939_v23 = vadd.f32 %v938_v22, %v937_v21 }
 0x153   : > { %940 = vadd.xlane.f32.xlu1 %v939_v23 }
 0x154   : > { %1623 = shalt.err (!%p1620_p6)
}
 0x155   : > { %s1624_s23 = scalar_lea.hbm %s2095_s14, 256  ;;  %s1628_s15 = scalar_lea.hbm %s2237_s13, 512 }
 0x156   : > { %p1625_p7 = scmp.ne.s32.totalorder %s2095_s14, %s1624_s23  ;;  %p1629_p2 = scmp.lt.s32.totalorder %s2095_s14, %s2237_s13 }
 0x157   : > { %p1630_p8 = scmp.lt.s32.totalorder %s1628_s15, %s1624_s23 }
 0x158   : > { %p1626_p10 = pnand %p1625_p7, %p1852_p9 }
 0x159   : > { %p1631_p0 = por %p1630_p8, %p1629_p2 }
 0x15a   : > { %p1627_p13 = pneg %p1626_p10 }
 0x15c   : > { %p1632_p1 = pnand %p1631_p0, %p1627_p13 }
 0x15e   : > { %1635 = shalt.err (!%p1632_p1)
}
 0x15f   : > { %s1749_s11 = smov 128   ;;  %s1750_s17 = smov 8  }
 0x160   : > { %1338 = dma.vmem_to_hbm [thread:$0]  (%p1852_p9), %s2085_s10, 256, %s2095_s14, %s953_s27, %s1749_s11, %s1749_s11, %s1750_s17  }
 0x161   : > { %s2238_s1 = sld [smem:[#allocation34_spill]]  ;;  %s958_s29 = scalar_lea.sflag [#allocation15], %s1988_s7 }
 0x162   : > { %s1636_s20 = scalar_lea.vmem %s2087_s16, 256  ;;  %s1751_s3 = smov [#allocation14]  }
 0x163   : > { %p1637_p3 = scmp.ne.s32.totalorder %s2087_s16, %s1636_s20  ;;  %s1640_s19 = sshll.u32 %s1751_s3, 4  ;;  %s1641_s19 = int_to_ptr.vmem [resolvable:$false] %s1640_s19 }
 0x164   : > { %s1642_s21 = scalar_lea.vmem %s1641_s19, 512  ;;  %p1643_p6 = scmp.lt.s32.totalorder %s2087_s16, %s1641_s19 }
 0x165   : > { %p1638_p4 = pnand %p1637_p3, %p1852_p9  ;;  %p1644_p7 = scmp.lt.s32.totalorder %s1642_s21, %s1636_s20 }
 0x167   : > { %s2128_s6 = scalar_lea.hbm %s2238_s1, %s1309_s18  ;;  %p1639_p5 = pneg %p1638_p4 }
 0x168   : > { %p1645_p10 = por %p1644_p7, %p1643_p6 }
 0x16a   : > { %p1646_p13 = pnand %p1645_p10, %p1639_p5 }
 0x16c   : > { %1649 = shalt.err (!%p1646_p13)
}
 0x16d   : > { %s1650_s10 = scalar_lea.hbm %s2128_s6, 256  ;;  %s1654_s14 = scalar_lea.hbm %s2238_s1, 512 }
 0x16e   : > { %p1651_p2 = scmp.ne.s32.totalorder %s2128_s6, %s1650_s10  ;;  %p1655_p1 = scmp.lt.s32.totalorder %s2128_s6, %s2238_s1 }
 0x16f   : > { %p1656_p3 = scmp.lt.s32.totalorder %s1654_s14, %s1650_s10 }
 0x170   : > { %p1652_p8 = pnand %p1651_p2, %p1852_p9 }
 0x171   : > { %p1657_p4 = por %p1656_p3, %p1655_p1 }
 0x172   : > { %p1653_p0 = pneg %p1652_p8 }
 0x174   : > { %p1658_p5 = pnand %p1657_p4, %p1653_p0 }
 0x176   : > { %1661 = shalt.err (!%p1658_p5)
}
 0x177   : > { %1339 = dma.vmem_to_hbm [thread:$0]  (%p1852_p9), %s2087_s16, 256, %s2128_s6, %s958_s29, %s1749_s11, %s1749_s11, %s1750_s17   ;;  %vm950_vm15 = vcmask 0  }
 0x178   : > { %p643_p6 = scmp.lt.s32.totalorder %s2235_s30, 1  ;;  %s2239_s25 = sld [smem:[#allocation35_spill]] }
 0x17a   : > { %s2253_s30 = smov (!%p643_p6, %s2235_s30), 1 }
 0x17e   : > { %s648_s15 = scalar_lea.vmem %s2239_s25, %s2253_s30 }
 0x1dc   : > { %v941_v17 = vpop.xlane.xlu1 %940 }
 0x1dd   : > { %v942_v24 = vrot.slane %v941_v17, 4 }
 0x1df   : > { %v943_v25 = vadd.f32 %v942_v24, %v941_v17 }
 0x1e1   : > { %v944_v26 = vrot.slane %v943_v25, 2 }
 0x1e3   : > { %v945_v27 = vadd.f32 %v944_v26, %v943_v25 }
 0x1e5   : > { %v946_v28 = vrot.slane %v945_v27, 1 }
 0x1e7   : > { %v947_v29 = vadd.f32 %v946_v28, %v945_v27 }
 0x1e9   : > { %1324 = vpush %v947_v29 }
 0x21a   : > { %s1325_s26 = spop %1324 }
 0x21b   : > { %v949_v30 = vstv %s1325_s26 }
 0x21c   : > { %951 = vst.msk [vmem:[%s648_s15] sm:$0x1] %vm950_vm15, %v949_v30 }
 0x21d PF: > { %s2240_s16 = sld [smem:[#allocation22_spill]]  ;;  %p1362_p9 = pnand %p1271_p12, %p1859_p11 }
 0x21e   : > { %s2242_s11 = sld [smem:[#allocation26_spill]] }
 0x21f   : > { %p1363_p7 = pneg %p1362_p9 }
 0x223   : > { %s1015_s17 = sand.u32 1, %s2240_s16  }
 0x224   : > { %s1016_s8 = scalar_lea.sflag [#allocation4], %s1015_s17 }
 0x225   : > { %1703 = dma.done.wait (%p1363_p7), %s1016_s8, 256  }
 0x226   : > { %1705 = vsyncadd (%p1363_p7), %s1016_s8, 4294967040  ;;  %s1025_s22 = scalar_lea.sflag [#allocation15], %s1015_s17 }
 0x227   : > { %1707 = dma.done.wait (%p1363_p7), %s1025_s22, 256  }
 0x228   : > { %1709 = vsyncadd (%p1363_p7), %s1025_s22, 4294967040  ;;  %s37_s10 = sadd.s32 1, %s2242_s11   ;;  %s2243_s30 = sld [smem:[#allocation23_spill]] }
 0x229   : > { %p34_p10 = scmp.ge.s32.totalorder %s37_s10, 4   ;;  %s2244_s29 = sld [smem:[#allocation29_spill]] }
 0x22a   : > { %s2245_s6 = sld [smem:[#allocation25_spill]]  ;;  %s2247_s27 = smov %s1716_s28 }
 0x22b   : > { %s2246_s9 = sld [smem:[#allocation27_spill]] }
 0x22c   :  { %36 = sbr.rel (!%p34_p10) target bundleno = 20 (0x14), region = 191 }
 0x22e   : > { %s2248_s28 = smov %s2243_s30 }
 0x230   : > { %s2249_s30 = smov %s2245_s6 }
 0x231   :  { %1039 = vsyncpa [#allocation3], 1 }
 0x232   :  { %1041 = vsyncpa [#allocation3 + $0x1], 1 }
 0x233   :  { %1042 = vsyncpa [#allocation6], 1 }
 0x234   :  { %1044 = vsyncpa [#allocation6 + $0x1], 1 }
 0x235   :  { %1045 = vsyncpa [#allocation9], 1 }
 0x236   :  { %1047 = vsyncpa [#allocation9 + $0x1], 1 }
 0x237   :  { %1048 = vsyncpa [#allocation12], 1 }
 0x238   :  { %1050 = vsyncpa [#allocation12 + $0x1], 1 }
 0x239   :  { %1051 = vsyncpa [#allocation4], 1 }
 0x23a   :  { %1053 = vsyncpa [#allocation4 + $0x1], 1 }
 0x23b   :  { %1054 = vsyncpa [#allocation15], 1 }
 0x23c   :  { %1056 = vsyncpa [#allocation15 + $0x1], 1 }

</bundles_post_ra>
